<compile_context>
chip_gen: v5e
topology: v5e:2x2
jax: 0.10.0
libtpu: 0.0.40
codegen_flags: <defaults>
</compile_context>

<pallas_src>
import functools

import numpy as np
import jax
import jax.numpy as jnp
from jax.experimental import pallas as pl
from jax.experimental.pallas import tpu as pltpu


# ---------------------------------------------------------------------------
# Interpolation-matrix construction (plain numpy, deterministic, cached)
# ---------------------------------------------------------------------------
def _bilinear_matrix(in_size: int, out_size: int) -> np.ndarray:
    """Matches torch interpolate(mode='bilinear', align_corners=False, antialias=False)."""
    # TODO(synk): torchvision>=0.17 Resize defaults antialias=True on tensors; this
    # implements antialias=False (materially different when heavily downscaling).
    if in_size == out_size:
        return np.eye(out_size, dtype=np.float32)
    dst = np.arange(out_size, dtype=np.float64)
    scale = in_size / out_size
    src = (dst + 0.5) * scale - 0.5
    src = np.maximum(src, 0.0)
    i0 = np.minimum(np.floor(src).astype(np.int64), in_size - 1)
    i1 = np.minimum(i0 + 1, in_size - 1)
    w1 = np.clip(src - i0, 0.0, 1.0)
    w0 = 1.0 - w1
    m = np.zeros((out_size, in_size), dtype=np.float32)
    m[np.arange(out_size), i0] += w0.astype(np.float32)
    m[np.arange(out_size), i1] += w1.astype(np.float32)
    return m


def _nearest_matrix(in_size: int, out_size: int) -> np.ndarray:
    """Matches torch interpolate(mode='nearest') index rule (one-hot rows)."""
    dst = np.arange(out_size, dtype=np.float64)
    scale = in_size / out_size
    src = np.minimum(np.floor(dst * scale).astype(np.int64), in_size - 1)
    m = np.zeros((out_size, in_size), dtype=np.float32)
    m[np.arange(out_size), src] = 1.0
    return m


@functools.lru_cache(maxsize=None)
def _cached_matrices(H, W, Hs, Ws, R):
    """Build (once per shape tuple) the bf16 interpolation matrices, both flip variants."""
    short, long_ = (H, W) if H <= W else (W, H)
    if short == R:
        rh, rw = H, W
    else:
        new_long = int(R * long_ / short)          # torchvision short-side rule
        rh, rw = (R, new_long) if H <= W else (new_long, R)

    if rh > rw:
        # TODO(synk): h > w branch of CenterCropOrPadSides (zero-pad sides, then
        # antialiased bilinear resize to (w, w)) is not implemented here.
        raise NotImplementedError("pad branch (h > w) not implemented")

    pad = (rw - rh) // 2
    out_hw = rh

    a_h = _bilinear_matrix(H, rh)      # (rh, H)
    a_w = _bilinear_matrix(W, rw)      # (rw, W)
    n_h = _nearest_matrix(Hs, rh)      # (rh, Hs)
    n_w = _nearest_matrix(Ws, rw)      # (rw, Ws)

    cols = np.arange(out_hw)
    # row-selection folding crop (+ optional flip) into the column matrix:
    #   variant 0: no flip, variant 1: horizontal flip
    sel = np.stack([pad + cols, rw - 1 - pad - cols], axis=0)           # (2, out_hw)
    mwT_both = np.ascontiguousarray(np.transpose(a_w[sel], (0, 2, 1)))  # (2, W,  out_hw)
    nwT_both = np.ascontiguousarray(np.transpose(n_w[sel], (0, 2, 1)))  # (2, Ws, out_hw)

    # bf16 operands: one-hot nearest weights are exact; bilinear fractions lose
    # ~2^-8 relative precision (sub-LSB on the [-1,1] output).
    return (out_hw,
            jnp.asarray(a_h, dtype=jnp.bfloat16),
            jnp.asarray(mwT_both, dtype=jnp.bfloat16),
            jnp.asarray(n_h, dtype=jnp.bfloat16),
            jnp.asarray(nwT_both, dtype=jnp.bfloat16))


# ---------------------------------------------------------------------------
# Fused Pallas kernel (grid over image channels; segmap at the last step)
# ---------------------------------------------------------------------------
def _transform_kernel(flip_ref, img_ref, seg_ref, ah_ref, mwT_ref, nh_ref, nwT_ref,
                      img_out_ref, seg_out_ref):
    # flip_ref : SMEM (1,) int32 scalar prefetch (used only in the index_maps)
    # img_ref  : (1, H, W)     f32  current channel plane
    # seg_ref  : (Hs, Ws)      f32  full segmap (constant block across the grid)
    # ah_ref   : (rh, H)       bf16 bilinear row-interp
    # mwT_ref  : (1, W, out)   bf16 bilinear col-interp with flip+crop folded, transposed
    # nh_ref   : (rh, Hs)      bf16 nearest row-interp (one-hot)
    # nwT_ref  : (1, Ws, out)  bf16 nearest col-interp with flip+crop folded, transposed
    del flip_ref

    # ---- image channel: bilinear resize + crop/flip + normalize to [-1, 1] ----
    x = img_ref[0].astype(jnp.bfloat16)                                   # (H, W)
    t = jnp.dot(ah_ref[...], x, preferred_element_type=jnp.float32)       # (rh, W) f32
    y = jnp.dot(t.astype(jnp.bfloat16), mwT_ref[0],
                preferred_element_type=jnp.float32)                        # (rh, out) f32
    img_out_ref[0] = y * (1.0 / 127.5) - 1.0                               # /127.5 - 1

    # ---- segmap: nearest resize + crop/flip, computed once on the resident block ----
    @pl.when(pl.program_id(0) == pl.num_programs(0) - 1)
    def _():
        s = seg_ref[...].astype(jnp.bfloat16)                              # (Hs, Ws)
        ts = jnp.dot(nh_ref[...], s, preferred_element_type=jnp.float32)   # (rh, Ws)
        seg_out_ref[...] = jnp.dot(ts.astype(jnp.bfloat16), nwT_ref[0],
                                   preferred_element_type=jnp.float32)     # (rh, out)


# ---------------------------------------------------------------------------
# Jitted hot path
# ---------------------------------------------------------------------------
@jax.jit
def _run_pallas(image, segmap, flip, ah, mwT_both, nh, nwT_both):
    C, H, W = image.shape
    Hs, Ws = segmap.shape
    rh = ah.shape[0]
    out_hw = mwT_both.shape[2]

    # VMEM budget: double-buffered inputs + resident constants + outputs + temporaries.
    est = (2 * (H * W * 4)                                   # image plane (pipelined)
           + (rh * H + W * out_hw + rh * Hs + Ws * out_hw) * 2 * 2   # bf16 matrices
           + Hs * Ws * 4 * 2                                 # segmap block
           + 2 * out_hw * out_hw * 4 * 2                     # both outputs
           + H * W * 2 + rh * W * 6 + out_hw * out_hw * 4    # image temporaries
           + Hs * Ws * 2 + rh * Ws * 6 + out_hw * out_hw * 4)  # segmap temporaries
    vmem_bytes = int(min(max(est * 12 // 10, 8 * 2**20), 44 * 2**20))

    img_out, seg_out = pl.pallas_call(
        _transform_kernel,
        out_shape=(jax.ShapeDtypeStruct((C, out_hw, out_hw), jnp.float32),
                   jax.ShapeDtypeStruct((out_hw, out_hw), jnp.float32)),
        grid_spec=pltpu.PrefetchScalarGridSpec(
            num_scalar_prefetch=1,
            grid=(C,),
            in_specs=[
                pl.BlockSpec((1, H, W), lambda c, flip_ref: (c, 0, 0)),
                pl.BlockSpec((Hs, Ws), lambda c, flip_ref: (0, 0)),
                pl.BlockSpec((rh, H), lambda c, flip_ref: (0, 0)),
                pl.BlockSpec((1, W, out_hw),
                             lambda c, flip_ref: (flip_ref[0], 0, 0)),
                pl.BlockSpec((rh, Hs), lambda c, flip_ref: (0, 0)),
                pl.BlockSpec((1, Ws, out_hw),
                             lambda c, flip_ref: (flip_ref[0], 0, 0)),
            ],
            out_specs=[
                pl.BlockSpec((1, out_hw, out_hw),
                             lambda c, flip_ref: (c, 0, 0)),
                pl.BlockSpec((out_hw, out_hw), lambda c, flip_ref: (0, 0)),
            ],
        ),
        compiler_params=pltpu.CompilerParams(
            # seg output block is resident across the channel axis -> "arbitrary".
            dimension_semantics=("arbitrary",),
            vmem_limit_bytes=vmem_bytes,
        ),
    )(flip, image, segmap, ah, mwT_both, nh, nwT_both)

    return img_out, seg_out


# ---------------------------------------------------------------------------
# Wrapper reproducing TrainTransformWithSegmap.forward semantics
# ---------------------------------------------------------------------------
def train_transform_with_segmap(image, segmap, key, train_resolution=512):
    image = jnp.asarray(image, jnp.float32)
    segmap = jnp.asarray(segmap, jnp.float32)
    C, H, W = image.shape
    Hs, Ws = segmap.shape

    # Matrices built once per shape tuple and kept on device.
    _, ah, mwT_both, nh, nwT_both = _cached_matrices(H, W, Hs, Ws, int(train_resolution))

    # RandomHorizontalFlip: decision stays on device (scalar prefetch selects the
    # precomputed flip/no-flip column matrix) -> no blocking device->host sync.
    flip = jnp.reshape(jax.random.bernoulli(key, 0.5).astype(jnp.int32), (1,))

    return _run_pallas(image, segmap, flip, ah, mwT_both, nh, nwT_both)


if __name__ == "__main__":
    key = jax.random.PRNGKey(0)
    k_img, k_seg, k_flip = jax.random.split(key, 3)

    # Small shapes: image (3, 24, 32) integer-valued pixels in [0, 255],
    # segmap (24, 32) with 19 classes, train_resolution = 16 (stand-in for 512).
    image = jnp.round(
        jax.random.uniform(k_img, (3, 24, 32), minval=0.0, maxval=255.0)
    ).astype(jnp.float32)
    segmap = jnp.floor(
        jax.random.uniform(k_seg, (24, 32), minval=0.0, maxval=19.0)
    ).astype(jnp.float32)

    img_out, seg_out = train_transform_with_segmap(image, segmap, k_flip,
                                                   train_resolution=16)
    jax.block_until_ready((img_out, seg_out))

    assert img_out.shape == (3, 16, 16), img_out.shape
    assert seg_out.shape == (16, 16), seg_out.shape

    img_np = np.asarray(img_out)
    assert np.all(img_np >= -1.02) and np.all(img_np <= 1.02), "image not in [-1, 1]"
    # Nearest path is exact (bf16 one-hot weights, small-int labels): outputs must
    # be drawn from the original label set.
    seg_np = np.asarray(seg_out)
    assert np.all(np.isin(seg_np, np.unique(np.asarray(segmap)))), "segmap labels changed"

    print("KERNEL_OK")
</pallas_src>

<mosaic_0001>
module attributes {stable_mosaic.version = 11 : i64} {
  func.func @_transform_kernel(%arg0: i32, %arg1: memref<1xi32, #tpu.memory_space<smem>>, %arg2: memref<1x24x32xf32, #tpu.memory_space<vmem>>, %arg3: memref<24x32xf32, #tpu.memory_space<vmem>>, %arg4: memref<16x24xbf16, #tpu.memory_space<vmem>>, %arg5: memref<1x32x16xbf16, #tpu.memory_space<vmem>>, %arg6: memref<16x24xbf16, #tpu.memory_space<vmem>>, %arg7: memref<1x32x16xbf16, #tpu.memory_space<vmem>>, %arg8: memref<1x16x16xf32, #tpu.memory_space<vmem>>, %arg9: memref<16x16xf32, #tpu.memory_space<vmem>>) attributes {dimension_semantics = [#tpu.dimension_semantics<arbitrary>], iteration_bounds = array<i64: 3>, scalar_prefetch = 1 : i64, scratch_operands = 0 : i64, tpu.core_type = #tpu.core_type<tc>, window_params = [{transform_indices = @transform_0, window_bounds = array<i64: 1, 24, 32>}, {pipeline_mode = #tpu.pipeline_mode<synchronous>, transform_indices = @transform_1, window_bounds = array<i64: 24, 32>}, {pipeline_mode = #tpu.pipeline_mode<synchronous>, transform_indices = @transform_2, window_bounds = array<i64: 16, 24>}, {transform_indices = @transform_3, window_bounds = array<i64: 1, 32, 16>}, {pipeline_mode = #tpu.pipeline_mode<synchronous>, transform_indices = @transform_4, window_bounds = array<i64: 16, 24>}, {transform_indices = @transform_5, window_bounds = array<i64: 1, 32, 16>}, {transform_indices = @transform_6, window_bounds = array<i64: 1, 16, 16>}, {pipeline_mode = #tpu.pipeline_mode<synchronous>, transform_indices = @transform_7, window_bounds = array<i64: 16, 16>}]} {
    %c0 = arith.constant 0 : index
    %c0_0 = arith.constant 0 : index
    %c0_1 = arith.constant 0 : index
    %0 = vector.load %arg2[%c0, %c0_0, %c0_1] : memref<1x24x32xf32, #tpu.memory_space<vmem>>, vector<1x24x32xf32>
    %1 = vector.shape_cast %0 : vector<1x24x32xf32> to vector<24x32xf32>
    %2 = arith.truncf %1 : vector<24x32xf32> to vector<24x32xbf16>
    %c0_2 = arith.constant 0 : index
    %c0_3 = arith.constant 0 : index
    %3 = vector.load %arg4[%c0_2, %c0_3] : memref<16x24xbf16, #tpu.memory_space<vmem>>, vector<16x24xbf16>
    %cst = arith.constant dense<0.000000e+00> : vector<16x32xf32>
    %4 = tpu.matmul %3, %2, %cst {dimension_numbers = #tpu.dot_dimension_numbers<[1], [0], [0], [1], [0, 0, 1, 1], [], []>} : vector<16x24xbf16>, vector<24x32xbf16>, vector<16x32xf32> -> vector<16x32xf32>
    %5 = arith.truncf %4 : vector<16x32xf32> to vector<16x32xbf16>
    %c0_4 = arith.constant 0 : index
    %c0_5 = arith.constant 0 : index
    %c0_6 = arith.constant 0 : index
    %6 = vector.load %arg5[%c0_4, %c0_5, %c0_6] : memref<1x32x16xbf16, #tpu.memory_space<vmem>>, vector<1x32x16xbf16>
    %7 = vector.shape_cast %6 : vector<1x32x16xbf16> to vector<32x16xbf16>
    %cst_7 = arith.constant dense<0.000000e+00> : vector<16x16xf32>
    %8 = tpu.matmul %5, %7, %cst_7 {dimension_numbers = #tpu.dot_dimension_numbers<[1], [0], [0], [1], [0, 0, 1, 1], [], []>} : vector<16x32xbf16>, vector<32x16xbf16>, vector<16x16xf32> -> vector<16x16xf32>
    %cst_8 = arith.constant 0.00784313772 : f32
    %9 = vector.broadcast %cst_8 : f32 to vector<16x16xf32>
    %10 = arith.mulf %8, %9 : vector<16x16xf32>
    %cst_9 = arith.constant 1.000000e+00 : f32
    %11 = vector.broadcast %cst_9 : f32 to vector<16x16xf32>
    %12 = arith.subf %10, %11 : vector<16x16xf32>
    %c0_10 = arith.constant 0 : index
    %c0_11 = arith.constant 0 : index
    %c0_12 = arith.constant 0 : index
    %13 = vector.load %arg8[%c0_10, %c0_11, %c0_12] : memref<1x16x16xf32, #tpu.memory_space<vmem>>, vector<1x16x16xf32>
    %14 = vector.shape_cast %13 : vector<1x16x16xf32> to vector<16x16xf32>
    %15 = vector.shape_cast %12 : vector<16x16xf32> to vector<1x16x16xf32>
    tpu.vector_store %arg8[%c0_10, %c0_11, %c0_12], %15 {strides = array<i32>} : memref<1x16x16xf32, #tpu.memory_space<vmem>>, vector<1x16x16xf32>,
    %c2_i32 = arith.constant 2 : i32
    %16 = arith.cmpi eq, %arg0, %c2_i32 : i32
    %17 = arith.extui %16 : i1 to i32
    %c0_i32 = arith.constant 0 : i32
    %18 = arith.cmpi ne, %17, %c0_i32 : i32
    scf.if %18 {
      %c0_13 = arith.constant 0 : index
      %c0_14 = arith.constant 0 : index
      %19 = vector.load %arg3[%c0_13, %c0_14] : memref<24x32xf32, #tpu.memory_space<vmem>>, vector<24x32xf32>
      %20 = arith.truncf %19 : vector<24x32xf32> to vector<24x32xbf16>
      %c0_15 = arith.constant 0 : index
      %c0_16 = arith.constant 0 : index
      %21 = vector.load %arg6[%c0_15, %c0_16] : memref<16x24xbf16, #tpu.memory_space<vmem>>, vector<16x24xbf16>
      %cst_17 = arith.constant dense<0.000000e+00> : vector<16x32xf32>
      %22 = tpu.matmul %21, %20, %cst_17 {dimension_numbers = #tpu.dot_dimension_numbers<[1], [0], [0], [1], [0, 0, 1, 1], [], []>} : vector<16x24xbf16>, vector<24x32xbf16>, vector<16x32xf32> -> vector<16x32xf32>
      %23 = arith.truncf %22 : vector<16x32xf32> to vector<16x32xbf16>
      %c0_18 = arith.constant 0 : index
      %c0_19 = arith.constant 0 : index
      %c0_20 = arith.constant 0 : index
      %24 = vector.load %arg7[%c0_18, %c0_19, %c0_20] : memref<1x32x16xbf16, #tpu.memory_space<vmem>>, vector<1x32x16xbf16>
      %25 = vector.shape_cast %24 : vector<1x32x16xbf16> to vector<32x16xbf16>
      %cst_21 = arith.constant dense<0.000000e+00> : vector<16x16xf32>
      %26 = tpu.matmul %23, %25, %cst_21 {dimension_numbers = #tpu.dot_dimension_numbers<[1], [0], [0], [1], [0, 0, 1, 1], [], []>} : vector<16x32xbf16>, vector<32x16xbf16>, vector<16x16xf32> -> vector<16x16xf32>
      %c0_22 = arith.constant 0 : index
      %c0_23 = arith.constant 0 : index
      %27 = vector.load %arg9[%c0_22, %c0_23] : memref<16x16xf32, #tpu.memory_space<vmem>>, vector<16x16xf32>
      tpu.vector_store %arg9[%c0_22, %c0_23], %26 {strides = array<i32>} : memref<16x16xf32, #tpu.memory_space<vmem>>, vector<16x16xf32>,
    } else {
    }
    return
  }
  func.func @transform_0(%arg0: i32, %arg1: memref<1xi32, #tpu.memory_space<smem>>) -> (i32, i32, i32) {
    %c0_i32 = arith.constant 0 : i32
    %c0_i32_0 = arith.constant 0 : i32
    %c0_i32_1 = arith.constant 0 : i32
    return %arg0, %c0_i32, %c0_i32_0 : i32, i32, i32
  }
  func.func @transform_1(%arg0: i32, %arg1: memref<1xi32, #tpu.memory_space<smem>>) -> (i32, i32) {
    %c0_i32 = arith.constant 0 : i32
    %c0_i32_0 = arith.constant 0 : i32
    %c0_i32_1 = arith.constant 0 : i32
    return %c0_i32, %c0_i32_0 : i32, i32
  }
  func.func @transform_2(%arg0: i32, %arg1: memref<1xi32, #tpu.memory_space<smem>>) -> (i32, i32) {
    %c0_i32 = arith.constant 0 : i32
    %c0_i32_0 = arith.constant 0 : i32
    %c0_i32_1 = arith.constant 0 : i32
    return %c0_i32, %c0_i32_0 : i32, i32
  }
  func.func @transform_3(%arg0: i32, %arg1: memref<1xi32, #tpu.memory_space<smem>>) -> (i32, i32, i32) {
    %c0 = arith.constant 0 : index
    %0 = memref.load %arg1[%c0] : memref<1xi32, #tpu.memory_space<smem>>
    %c0_i32 = arith.constant 0 : i32
    %c0_i32_0 = arith.constant 0 : i32
    %c0_i32_1 = arith.constant 0 : i32
    return %0, %c0_i32, %c0_i32_0 : i32, i32, i32
  }
  func.func @transform_4(%arg0: i32, %arg1: memref<1xi32, #tpu.memory_space<smem>>) -> (i32, i32) {
    %c0_i32 = arith.constant 0 : i32
    %c0_i32_0 = arith.constant 0 : i32
    %c0_i32_1 = arith.constant 0 : i32
    return %c0_i32, %c0_i32_0 : i32, i32
  }
  func.func @transform_5(%arg0: i32, %arg1: memref<1xi32, #tpu.memory_space<smem>>) -> (i32, i32, i32) {
    %c0 = arith.constant 0 : index
    %0 = memref.load %arg1[%c0] : memref<1xi32, #tpu.memory_space<smem>>
    %c0_i32 = arith.constant 0 : i32
    %c0_i32_0 = arith.constant 0 : i32
    %c0_i32_1 = arith.constant 0 : i32
    return %0, %c0_i32, %c0_i32_0 : i32, i32, i32
  }
  func.func @transform_6(%arg0: i32, %arg1: memref<1xi32, #tpu.memory_space<smem>>) -> (i32, i32, i32) {
    %c0_i32 = arith.constant 0 : i32
    %c0_i32_0 = arith.constant 0 : i32
    %c0_i32_1 = arith.constant 0 : i32
    return %arg0, %c0_i32, %c0_i32_0 : i32, i32, i32
  }
  func.func @transform_7(%arg0: i32, %arg1: memref<1xi32, #tpu.memory_space<smem>>) -> (i32, i32) {
    %c0_i32 = arith.constant 0 : i32
    %c0_i32_0 = arith.constant 0 : i32
    %c0_i32_1 = arith.constant 0 : i32
    return %c0_i32, %c0_i32_0 : i32, i32
  }
}

</mosaic_0001>

<bundles_post_ra>
// kernel: _run_pallas.1
= control target key start
LH: loop header
LB: loop body
LE: loop exit
PB: predicated region body
PF: predicated region fallthrough
CT: control target
= control target key end

     0   :  { %s1181_s0 = inlined_call_operand.<no memory space> [shape: s32[1], index: 0, kind: input, shape index: {}]   ;;  %s1182_s1 = inlined_call_operand.vmem [shape: f32[3,24,32], index: 1, kind: input, shape index: {}]   ;;  %s1183_s2 = inlined_call_operand.hbm [shape: f32[24,32], index: 2, kind: input, shape index: {}]   ;;  %s1184_s3 = inlined_call_operand.vmem [shape: bf16[16,24], index: 3, kind: input, shape index: {}]   ;;  %s1185_s4 = inlined_call_operand.vmem [shape: bf16[2,32,16], index: 4, kind: input, shape index: {}]   ;;  %s1186_s5 = inlined_call_operand.hbm [shape: bf16[16,24], index: 5, kind: input, shape index: {}]   ;;  %s1187_s6 = inlined_call_operand.vmem [shape: bf16[2,32,16], index: 6, kind: input, shape index: {}]   ;;  %s1188_s7 = inlined_call_operand.hbm [shape: f32[3,16,16], index: 7, kind: output, shape index: {0}]   ;;  %s1189_s8 = inlined_call_operand.hbm [shape: f32[16,16], index: 8, kind: output, shape index: {1}]  }
   0x1   :  { %1190 = sst [smem:[#allocation16_spill]] %s1182_s1 }
   0x2   :  { %14 = sst [smem:[#allocation3]] %s1181_s0 }
   0x3   :  { %15 = vsyncpa [#allocation5], 0 }
   0x4   :  { %16 = vsyncpa [#allocation8], 0 }
   0x5   :  { %17 = vsyncpa [#allocation6], 0 }
   0x6   :  { %19 = vsyncpa [#allocation6 + $0x1], 0 }
   0x7   :  { %20 = vsyncpa [#allocation11], 0  ;;  %s1027_s29 = smov 0   ;;  %s1029_s30 = smov 0  }
   0x8   :  { %s1031_s9 = smov 0   ;;  %s1033_s10 = smov 0  }
   0x9 LB: > { %s1048_s0 = sadd.s32 4294967295, %s968_s10   ;;  %s671_s11 = sadd.s32 4294967294, %s968_s10   ;;  %s968_s10 = sphi %s1033_s10, %s1198_s10   ;;  %s964_s9 = sphi %s1031_s9, %s1197_s9   ;;  %s960_s30 = sphi %s1029_s30, %s1196_s30   ;;  %s956_s29 = sphi %s1027_s29, %s1195_s29  }
   0xa   : > { %s1052_s12 = sadd.s32 1, %s968_s10   ;;  %s178_s13 = sadd.s32 1, %s964_s9 }
   0xb   : > { %s175_s14 = ssub.s32 %s968_s10, %s1052_s12  ;;  %p188_p0 = scmp.ne.s32.totalorder %s964_s9, %s960_s30 }
   0xc   : > { %p176_p1 = scmp.eq.s32.totalorder %s175_s14, 0  ;;  %p189_p2 = scmp.eq.s32.totalorder %s1048_s0, 2 }
   0xd   : > { %p194_p3 = scmp.ne.s32.totalorder %s960_s30, %s956_s29  ;;  %p195_p4 = scmp.eq.s32.totalorder %s671_s11, 2 }
   0xe   : > { %s1063_s15 = scalar_select %p176_p1, %s964_s9, %s178_s13  }
   0xf   : > { %p1067_p5 = por %p189_p2, %p188_p0  ;;  %p1071_p6 = por %p195_p4, %p194_p3 }
  0x10   : > { %p672_p7 = scmp.ge.s32.totalorder %s968_s10, 1  ;;  %p223_p8 = scmp.lt.s32.totalorder %s968_s10, 4 }
  0x11   : > { %p758_p9 = scmp.eq.s32.totalorder %s1048_s0, 0  ;;  %s234_s21 = sshll.u32 %s1183_s2, 4  ;;  %s235_s21 = int_to_ptr.hbm [resolvable:$true] %s234_s21 }
  0x12   : > { %p1078_p10 = pnand %p672_p7, %p223_p8  ;;  %s970_s22 = smov [#allocation4]  }
  0x13   : > { %s236_s23 = sshll.u32 %s970_s22, 4  ;;  %s261_s26 = sshll.u32 %s1186_s5, 4  ;;  %s237_s23 = int_to_ptr.vmem [resolvable:$true] %s236_s23  ;;  %s262_s26 = int_to_ptr.hbm [resolvable:$true] %s261_s26 }
  0x14   : > { %p747_p11 = pneg %p1078_p10  ;;  %s971_s27 = smov 128  }
  0x15   : > { %s972_s28 = smov 8   ;;  %s973_s11 = smov [#allocation7]  }
  0x16   : > { %p748_p12 = pnand %p758_p9, %p747_p11  ;;  %s263_s13 = sshll.u32 %s973_s11, 4  ;;  %s264_s13 = int_to_ptr.vmem [resolvable:$true] %s263_s13 }
  0x17   : > { %s974_s14 = smov 64   ;;  %s975_s19 = smov 4  }
  0x18   : > { %750 = dma.hbm_to_vmem [thread:$0]  (!%p748_p12), %s235_s21, 384, %s237_s23, [#allocation5], %s971_s27, %s971_s27, %s972_s28  }
  0x19   : > { %753 = dma.hbm_to_vmem [thread:$0]  (!%p748_p12), %s262_s26, 128, %s264_s13, [#allocation8], %s974_s14, %s974_s14, %s975_s19  }
  0x1a   : > { %297 = sbr.rel (%p1078_p10) target bundleno = 631 (0x277), region = 44 }
  0x1f   : > { %939 = dma.done.wait (%p758_p9), [#allocation5], 384  }
  0x20   : > { %941 = vsyncadd (%p758_p9), [#allocation5], 4294966912 }
  0x21   : > { %943 = dma.done.wait (%p758_p9), [#allocation8], 128  }
  0x22   : > { %945 = vsyncadd (%p758_p9), [#allocation8], 4294967168  ;;  %p347_p13 = scmp.lt.s32.totalorder %s1048_s0, 2  ;;  %s359_s20 = sld [smem:[#allocation3]]  ;;  %vm383_vm0 = vcmask 1043456   ;;  %v725_v6 = vld [vmem:[%s1184_s3] sm:$0xff] }
  0x23   : > { %s1194_s1 = sld [smem:[#allocation16_spill]]  ;;  %vm379_vm1 = vcmask 195584   ;;  %vm418_vm2 = vcmask 261120   ;;  %vm440_vm3 = vcmask 130048   ;;  %p701_p1 = scmp.ne.s32.totalorder %s1048_s0, 2 }
  0x24   : > { %s348_s21 = scalar_select %p347_p13, %s1048_s0, 2 }
  0x26   : > { %s732_s22 = smul.u32 24, %s348_s21  ;;  %s342_s21 = sand.u32 1, %s960_s30  }
  0x28   : > { %p360_p0 = scmp.lt.s32.totalorder %s359_s20, 1 }
  0x29   : > { %s351_s24 = scalar_lea.vmem %s1194_s1, %s732_s22  ;;  %s679_s22 = sshll.u32 %s342_s21, 4 }
  0x2a   : > { %v369_v0 = vld [vmem:[%s351_s24 + $0x10] sm:$0xff]  ;;  %v367_v2 = vld [vmem:[%s351_s24] sm:$0xff]  ;;  %v368_v3 = vld [vmem:[%s351_s24 + $0x8] sm:$0xff]  ;;  %s1200_s20 = smov (!%p360_p0, %s359_s20), 1  ;;  %s1124_s18 = scalar_lea.vmem [#allocation9], %s679_s22 }
  0x2b   : > { %v371_v1 = vpack.c.bf16 %v369_v0, %v369_v0  ;;  %s724_s25 = sshll.u32 %s1200_s20, 4  ;;  %v370_v5 = vpack.c.bf16 %v368_v3, %v367_v2 }
  0x2c   : > { %s1111_s28 = scalar_lea.vmem %s1187_s6, %s724_s25  ;;  %s357_s20 = scalar_lea.vmem %s1185_s4, %s724_s25 }
  0x2d   : > { %v385_v4 = vsel %vm383_vm0, %v371_v1, 0  ;;  %v727_v7 = vld [vmem:[%s357_s20 + $0x8] sm:$0xff]  ;;  %v726_v8 = vld [vmem:[%s357_s20] sm:$0xff] }
  0x2e   : > { %393 = vmatpush.bf16.msra.mxu0 %v385_v4  ;;  %428 = vmatpush.bf16.msra.mxu1 %v727_v7 }
  0x32   : > { %394 = vmatpush.bf16.msra.mxu0 %v370_v5  ;;  %429 = vmatpush.bf16.msra.mxu1 %v726_v8 }
  0x35   : > { %689 = vmatmul.msk.bf16.vlgmr.msra.gmra.mxu0 %vm379_vm1, %v725_v6 }
  0xb2   : > { %v396_v9 = vpop.f32.mrf.mxu0 }
  0xba   : > { %v398_v10 = vpop.f32.mrf.mxu0 }
  0xbb   : > { %v401_v11 = vpack.c.bf16 %v398_v10, %v396_v9 }
  0xbd   : > { %698 = vmatmul.msk.bf16.vlgmr.msra.gmra.mxu1 %vm418_vm2, %v401_v11 }
 0x13a   : > { %v431_v12 = vpop.f32.mrf.mxu1 }
 0x13b   : > { %v436_v13 = vmul.f32 0.007843138, %v431_v12 }
 0x13d   : > { %v699_v14 = vadd.f32 -1.0, %v436_v13 }
 0x13f   : > { %441 = vst.msk [vmem:[%s1124_s18] sm:$0xff] %vm440_vm3, %v699_v14 }
 0x142   : > { %v433_v15 = vpop.f32.mrf.mxu1 }
 0x143   : > { %v437_v16 = vmul.f32 0.007843138, %v433_v15  ;;  %446 = sbr.rel (%p701_p1) target bundleno = 610 (0x262), region = 56 }
 0x145   : > { %v700_v17 = vadd.f32 -1.0, %v437_v16 }
 0x147   : > { %442 = vst.msk [vmem:[%s1124_s18 + $0x8] sm:$0xff] %vm440_vm3, %v700_v17 }
 0x148   : > { %v449_v18 = vld [vmem:[#allocation4 + $0x10] sm:$0xff]  ;;  %v447_v20 = vld [vmem:[#allocation4] sm:$0xff]  ;;  %v448_v21 = vld [vmem:[#allocation4 + $0x8] sm:$0xff] }
 0x149   : > { %v451_v19 = vpack.c.bf16 %v449_v18, %v449_v18  ;;  %v450_v23 = vpack.c.bf16 %v448_v21, %v447_v20  ;;  %v728_v24 = vld [vmem:[#allocation7] sm:$0xff]  ;;  %v730_v25 = vld [vmem:[%s1111_s28 + $0x8] sm:$0xff]  ;;  %v729_v26 = vld [vmem:[%s1111_s28] sm:$0xff] }
 0x14a   : > { %505 = vmatpush.bf16.msra.mxu1 %v730_v25 }
 0x14b   : > { %v463_v22 = vsel %vm383_vm0, %v451_v19, 0 }
 0x14c   : > { %471 = vmatpush.bf16.msra.mxu0 %v463_v22 }
 0x14e   : > { %506 = vmatpush.bf16.msra.mxu1 %v729_v26 }
 0x150   : > { %472 = vmatpush.bf16.msra.mxu0 %v450_v23 }
 0x153   : > { %706 = vmatmul.msk.bf16.vlgmr.msra.gmra.mxu0 %vm379_vm1, %v728_v24 }
 0x1d0   : > { %v474_v27 = vpop.f32.mrf.mxu0 }
 0x1d8   : > { %v476_v28 = vpop.f32.mrf.mxu0 }
 0x1d9   : > { %v479_v29 = vpack.c.bf16 %v476_v28, %v474_v27 }
 0x1db   : > { %715 = vmatmul.msk.bf16.vlgmr.msra.gmra.mxu1 %vm418_vm2, %v479_v29 }
 0x258   : > { %v508_v30 = vpop.f32.mrf.mxu1 }
 0x259   : > { %513 = vst.msk [vmem:[#allocation10] sm:$0xff] %vm440_vm3, %v508_v30 }
 0x260   : > { %v510_v31 = vpop.f32.mrf.mxu1 }
 0x261   : > { %514 = vst.msk [vmem:[#allocation10 + $0x8] sm:$0xff] %vm440_vm3, %v510_v31 }
 0x262 PF: > { %s731_s23 = sshll.u32 %s1048_s0, 4  ;;  %s528_s27 = sshll.u32 %s1124_s18, 4  ;;  %s529_s27 = int_to_ptr.vmem [resolvable:$true] %s528_s27 }
 0x263   : > { %s527_s26 = scalar_lea.hbm %s1188_s7, %s731_s23  ;;  %s516_s11 = scalar_lea.sflag [#allocation6], %s342_s21 }
 0x264   : > { %s530_s28 = sshll.u32 %s527_s26, 4  ;;  %s886_s22 = scalar_lea.hbm %s1188_s7, 48  ;;  %s531_s28 = int_to_ptr.hbm [resolvable:$true] %s530_s28 }
 0x265   : > { %s880_s13 = sshra.s32 %s531_s28, 4  ;;  %s881_s13 = int_to_ptr.hbm [resolvable:$true] %s880_s13 }
 0x266   : > { %s882_s14 = scalar_lea.hbm %s881_s13, 16  ;;  %p887_p8 = scmp.lt.s32.totalorder %s881_s13, %s1188_s7 }
 0x267   : > { %p883_p3 = scmp.ne.s32.totalorder %s881_s13, %s882_s14  ;;  %p888_p9 = scmp.lt.s32.totalorder %s886_s22, %s882_s14 }
 0x269   : > { %p884_p4 = pnand %p883_p3, %p1067_p5  ;;  %p889_p10 = por %p888_p9, %p887_p8 }
 0x26b   : > { %p885_p7 = pneg %p884_p4 }
 0x26d   : > { %p890_p11 = pnand %p889_p10, %p885_p7 }
 0x26f   : > { %893 = shalt.err (!%p890_p11)
}
 0x270   : > { %s976_s21 = smov 128   ;;  %s977_s18 = smov 8  }
 0x271   : > { %741 = dma.vmem_to_hbm [thread:$0]  (%p1067_p5), %s529_s27, 256, %s531_s28, %s516_s11, %s976_s21, %s976_s21, %s977_s18  }
 0x272   : > { %s978_s23 = smov [#allocation10]   ;;  %s544_s20 = sshll.u32 %s1189_s8, 4  ;;  %s545_s20 = int_to_ptr.hbm [resolvable:$true] %s544_s20 }
 0x273   : > { %s542_s25 = sshll.u32 %s978_s23, 4  ;;  %s543_s25 = int_to_ptr.vmem [resolvable:$true] %s542_s25 }
 0x274   : > { %743 = dma.vmem_to_hbm [thread:$0]  (%p189_p2), %s543_s25, 256, %s545_s20, [#allocation11], %s976_s21, %s976_s21, %s977_s18  }
 0x275   : > { %947 = dma.done.wait (%p189_p2), [#allocation11], 256  }
 0x276   : > { %949 = vsyncadd (%p189_p2), [#allocation11], 4294967040 }
 0x277 PF: > { %p764_p5 = scmp.ge.s32.totalorder %s968_s10, 2  ;;  %s564_s1 = sand.u32 1, %s956_s29  }
 0x278   : > { %s565_s16 = scalar_lea.sflag [#allocation6], %s564_s1 }
 0x279   : > { %p755_p12 = pnand %p764_p5, %p1071_p6 }
 0x27b   : > { %p756_p13 = pneg %p755_p12 }
 0x27d   : > { %951 = dma.done.wait (%p756_p13), %s565_s16, 256  }
 0x27e   : > { %953 = vsyncadd (%p756_p13), %s565_s16, 4294967040  ;;  %p23_p0 = scmp.ge.s32.totalorder %s1052_s12, 5   ;;  %s1195_s29 = smov %s960_s30 }
 0x27f   : > { %s1196_s30 = smov %s964_s9  ;;  %s1197_s9 = smov %s1063_s15 }
 0x280   : > { %s1198_s10 = smov %s1052_s12  ;;  %25 = sbr.rel (!%p23_p0) target bundleno = 9 (0x9), region = 106 }
 0x285   :  { %571 = vsyncpa [#allocation5], 1 }
 0x286   :  { %573 = vsyncpa [#allocation5 + $0x1], 1 }
 0x287   :  { %574 = vsyncpa [#allocation8], 1 }
 0x288   :  { %575 = vsyncpa [#allocation6], 1 }
 0x289   :  { %577 = vsyncpa [#allocation6 + $0x1], 1 }
 0x28a   :  { %578 = vsyncpa [#allocation11], 1 }

</bundles_post_ra>
